<compile_context>
chip_gen: v6e
topology: v6e:2x2x1
jax: 0.10.0
libtpu: 0.0.40
codegen_flags: <defaults>
</compile_context>

<pallas_src>
import math

import jax
import jax.numpy as jnp
from jax import lax
from jax.experimental import pallas as pl
from jax.experimental.pallas import tpu as pltpu


def _round_up(a, b):
    return (a + b - 1) // b * b


def _vmem_budget_bytes():
    """Usable VMEM budget, leaving headroom for compiler scratch/semaphores."""
    try:
        cap = pltpu.get_tpu_info().vmem_capacity_bytes
    except Exception:
        cap = 64 * 1024 * 1024  # conservative (v7x-sized) default
    return int(cap * 0.78)      # ~100 MiB on 128-MiB parts, ~50 MiB on v7x


def choose_hidden_tile(hidden, dim, w_itemsize, budget=None):
    """Hidden (reduction) tile: multiple of 128, weight tiles <= ~half budget."""
    budget = budget if budget is not None else _vmem_budget_bytes()
    th = 512 if budget > 80 * 1024 * 1024 else 256
    # Double-buffered weight tiles per k-step: w13 (dim x 2*th) + w2 (th x dim)
    # = 3*th*dim elems, x2 buffers.  Keep that under ~half the budget.
    max_th = budget // (2 * 3 * dim * w_itemsize * 2)
    max_th = max(128, (max_th // 128) * 128)
    th = min(th, max_th, _round_up(hidden, 128))
    return max(128, (th // 128) * 128)


def prepare_ffn_weights(w1, w2, w3, *, th=None):
    """ONE-TIME weight prep (do this at init / weight load, not per forward).

    w1: [hidden, dim]   (nn.Linear(dim, hidden).weight)
    w2: [dim, hidden]   (nn.Linear(hidden, dim).weight)
    w3: [hidden, dim]   (nn.Linear(dim, hidden).weight)

    Returns:
      w13: [n_k, dim, 2*th]  per-tile up-projection weight in canonical (K, N)
           layout; lanes [0:th) are W1's tile, lanes [th:2*th) are W3's tile.
      w2t: [n_k, th, dim]    per-tile down-projection weight in (K, N) layout.
    """
    hidden, dim = w1.shape
    if th is None:
        th = choose_hidden_tile(hidden, dim, jnp.dtype(w1.dtype).itemsize)
    h_pad = _round_up(hidden, th)
    if h_pad != hidden:  # zero rows contribute exactly zero to SwiGLU
        pad = h_pad - hidden
        w1 = jnp.pad(w1, ((0, pad), (0, 0)))
        w3 = jnp.pad(w3, ((0, pad), (0, 0)))
        w2 = jnp.pad(w2, ((0, 0), (0, pad)))
    n_k = h_pad // th
    w1t = w1.reshape(n_k, th, dim).transpose(0, 2, 1)   # [n_k, dim, th]
    w3t = w3.reshape(n_k, th, dim).transpose(0, 2, 1)   # [n_k, dim, th]
    w13 = jnp.concatenate([w1t, w3t], axis=-1)          # [n_k, dim, 2*th]
    w2t = w2.T.reshape(n_k, th, dim)                    # [n_k, th, dim]
    return w13, w2t


def _ffn_kernel(x_ref, w13_ref, w2_ref, o_ref, acc_ref):
    # x_ref:   (tm, dim)          token tile (resident across the k axis)
    # w13_ref: (1, dim, 2*th)     stacked W1|W3 hidden-tile, (K, N) layout
    # w2_ref:  (1, th, dim)       W2 hidden-tile, (K, N) layout
    # o_ref:   (tm, dim)          output tile (written on last k)
    # acc_ref: (tm, dim) f32      accumulator scratch
    k = pl.program_id(1)

    @pl.when(k == 0)
    def _():
        acc_ref[...] = jnp.zeros_like(acc_ref)

    th = w2_ref.shape[1]
    x = x_ref[...]
    # Single up-projection dot for both W1 and W3 (f32 accumulation on MXU).
    x13 = jnp.dot(x, w13_ref[0], preferred_element_type=jnp.float32)  # (tm, 2*th)
    x1 = x13[:, :th]          # lane-aligned slice (th is a multiple of 128)
    x3 = x13[:, th:]
    # SwiGLU gate in f32 (VPU + EUP sigmoid), cast back for the MXU feed.
    h = (x1 * jax.nn.sigmoid(x1)) * x3
    # Partial down-projection for this hidden chunk, canonical (M,K)x(K,N).
    acc_ref[...] += jnp.dot(h.astype(x.dtype), w2_ref[0],
                            preferred_element_type=jnp.float32)

    @pl.when(k == pl.num_programs(1) - 1)
    def _():
        o_ref[...] = acc_ref[...].astype(o_ref.dtype)


def feed_forward_pallas(x, w13, w2t, *, tm=None):
    """SwiGLU FFN on pre-prepared weights (see prepare_ffn_weights).

    x:   [..., dim]
    w13: [n_k, dim, 2*th]
    w2t: [n_k, th, dim]
    """
    *lead, dim = x.shape
    n_k, th, dim2 = w2t.shape
    assert dim2 == dim and w13.shape == (n_k, dim, 2 * th)
    M = math.prod(lead) if lead else 1

    x_itemsize = jnp.dtype(x.dtype).itemsize
    w_itemsize = jnp.dtype(w13.dtype).itemsize
    sub = {4: 8, 2: 16, 1: 32}.get(x_itemsize, 8)

    budget = _vmem_budget_bytes()
    if tm is None:
        # Large tm on 128-MiB parts (v5e/v6e) to amortize weight re-streaming;
        # modest tm on v7x (64 MiB physical VMEM, ~3.2 TB/s HBM).
        tm = 768 if budget > 80 * 1024 * 1024 else 256

    def tile_bytes(tm_):
        return (2 * tm_ * dim * x_itemsize                # x (double-buffered)
                + 2 * tm_ * dim * x_itemsize              # out (double-buffered)
                + tm_ * dim * 4                           # f32 accumulator
                + 2 * 3 * th * dim * w_itemsize           # w13 + w2 tiles (x2 bufs)
                + tm_ * 2 * th * 4                        # x13 intermediate (f32)
                + tm_ * th * (4 + x_itemsize))            # gate + recast copy

    tm = min(tm, _round_up(M, sub))
    tm = max(sub, _round_up(tm, sub))
    while tm > sub and tile_bytes(tm) > budget:           # auto-shrink to fit
        tm = max(sub, _round_up(tm // 2, sub))

    m_pad = _round_up(M, tm)
    x2d = x.reshape(M, dim)
    if m_pad != M:
        x2d = jnp.pad(x2d, ((0, m_pad - M), (0, 0)))

    n_m = m_pad // tm
    grid = (n_m, n_k)
    hidden_pad = n_k * th

    weight_bytes = int((w13.size + w2t.size) * w_itemsize)
    cost = pl.CostEstimate(
        flops=6 * M * dim * hidden_pad,
        transcendentals=M * hidden_pad,
        # Weights are re-streamed once per M tile; x read + output write once.
        bytes_accessed=n_m * weight_bytes + 2 * m_pad * dim * x_itemsize,
    )

    out2d = pl.pallas_call(
        _ffn_kernel,
        out_shape=jax.ShapeDtypeStruct((m_pad, dim), x.dtype),
        grid_spec=pltpu.PrefetchScalarGridSpec(
            num_scalar_prefetch=0,
            grid=grid,
            in_specs=[
                pl.BlockSpec((tm, dim), lambda i, k: (i, 0)),           # x
                pl.BlockSpec((1, dim, 2 * th), lambda i, k: (k, 0, 0)),  # W1|W3
                pl.BlockSpec((1, th, dim), lambda i, k: (k, 0, 0)),      # W2^T
            ],
            out_specs=pl.BlockSpec((tm, dim), lambda i, k: (i, 0)),
            scratch_shapes=[pltpu.VMEM((tm, dim), jnp.float32)],
        ),
        compiler_params=pltpu.CompilerParams(
            dimension_semantics=("parallel", "arbitrary"),
            vmem_limit_bytes=int(budget),
        ),
        cost_estimate=cost,
    )(x2d, w13, w2t)

    if m_pad != M:
        out2d = out2d[:M]
    return out2d.reshape(*lead, dim)


def feed_forward(x, w1, w2, w3, *, th=None, tm=None):
    """Convenience one-shot API (preps weights on every call; prefer
    prepare_ffn_weights + feed_forward_pallas in real use)."""
    w13, w2t = prepare_ffn_weights(w1, w2, w3, th=th)
    return feed_forward_pallas(x, w13, w2t, tm=tm)


# ----------------------------------------------------------------------------
# Helpers mirroring the PyTorch module's __init__ / reset_parameters + tests.
# ----------------------------------------------------------------------------
def _hidden_dim(dim, hidden_dim, multiple_of, ffn_dim_multiplier):
    hidden_dim = int(2 * hidden_dim / 3)
    if ffn_dim_multiplier is not None:
        hidden_dim = int(ffn_dim_multiplier * hidden_dim)
    return multiple_of * ((hidden_dim + multiple_of - 1) // multiple_of)


def _trunc_normal(key, shape, std):
    # matches nn.init.trunc_normal_(mean=0, std=std, a=-3*std, b=3*std)
    return std * jax.random.truncated_normal(key, -3.0, 3.0, shape, jnp.float32)


def _reference(x, w1, w2, w3):
    x1 = jnp.einsum("...d,hd->...h", x, w1)
    x3 = jnp.einsum("...d,hd->...h", x, w3)
    h = jax.nn.silu(x1) * x3
    return jnp.einsum("...h,dh->...d", h, w2)


if __name__ == "__main__":
    # ---- Test 1: module-shaped toy config (f32) --------------------------
    dim = 128
    hidden = _hidden_dim(dim, 256, 128, 1)   # -> 256
    B, S = 2, 8

    key = jax.random.PRNGKey(0)
    kx, k1, k2, k3 = jax.random.split(key, 4)
    x = jax.random.normal(kx, (B, S, dim), jnp.float32)
    in_std, out_std = dim ** (-0.5), hidden ** (-0.5)
    w1 = _trunc_normal(k1, (hidden, dim), in_std)    # nn.Linear(dim, hidden).weight
    w3 = _trunc_normal(k3, (hidden, dim), in_std)
    w2 = _trunc_normal(k2, (dim, hidden), out_std)   # nn.Linear(hidden, dim).weight

    w13, w2t = prepare_ffn_weights(w1, w2, w3)       # one-time prep
    out = jax.block_until_ready(feed_forward_pallas(x, w13, w2t))
    ref = _reference(x, w1, w2, w3)
    assert out.shape == (B, S, dim)
    assert jnp.allclose(out, ref, atol=1e-4, rtol=1e-4), "mismatch vs reference (f32)"

    # ---- Test 2: ragged M, multi M-tile, multi k-tile + padded hidden ----
    dim2, hidden2 = 256, 384
    B2, S2 = 3, 80                                   # M = 240 (not mult of 128)
    key2 = jax.random.PRNGKey(1)
    kx2, k1b, k2b, k3b = jax.random.split(key2, 4)
    x2 = jax.random.normal(kx2, (B2, S2, dim2), jnp.float32)
    w1b = _trunc_normal(k1b, (hidden2, dim2), dim2 ** -0.5)
    w3b = _trunc_normal(k3b, (hidden2, dim2), dim2 ** -0.5)
    w2b = _trunc_normal(k2b, (dim2, hidden2), hidden2 ** -0.5)

    w13b, w2tb = prepare_ffn_weights(w1b, w2b, w3b, th=256)  # hidden padded 384->512
    out2 = jax.block_until_ready(feed_forward_pallas(x2, w13b, w2tb, tm=128))
    ref2 = _reference(x2, w1b, w2b, w3b)
    assert jnp.allclose(out2, ref2, atol=1e-3, rtol=1e-3), "mismatch vs reference (tiled)"

    # ---- Test 3: bf16 activations/weights, f32 gate math -----------------
    xb = x.astype(jnp.bfloat16)
    w1c, w2c, w3c = (w.astype(jnp.bfloat16) for w in (w1, w2, w3))
    w13c, w2tc = prepare_ffn_weights(w1c, w2c, w3c)
    out3 = jax.block_until_ready(feed_forward_pallas(xb, w13c, w2tc))
    ref3 = _reference(xb.astype(jnp.float32), w1c.astype(jnp.float32),
                      w2c.astype(jnp.float32), w3c.astype(jnp.float32))
    assert jnp.allclose(out3.astype(jnp.float32), ref3, atol=5e-2, rtol=5e-2), \
        "mismatch vs reference (bf16)"

    print("KERNEL_OK")
</pallas_src>

<mosaic_0001>
module attributes {stable_mosaic.version = 11 : i64} {
  func.func @_ffn_kernel(%arg0: i32, %arg1: i32, %arg2: memref<16x128xf32, #tpu.memory_space<vmem>>, %arg3: memref<1x128x512xf32, #tpu.memory_space<vmem>>, %arg4: memref<1x256x128xf32, #tpu.memory_space<vmem>>, %arg5: memref<16x128xf32, #tpu.memory_space<vmem>>, %arg6: memref<16x128xf32, #tpu.memory_space<vmem>>) attributes {dimension_semantics = [#tpu.dimension_semantics<parallel>, #tpu.dimension_semantics<arbitrary>], iteration_bounds = array<i64: 1, 1>, scalar_prefetch = 0 : i64, scratch_operands = 1 : i64, tpu.core_type = #tpu.core_type<tc>, window_params = [{transform_indices = @transform_0, window_bounds = array<i64: 16, 128>}, {transform_indices = @transform_1, window_bounds = array<i64: 1, 128, 512>}, {transform_indices = @transform_2, window_bounds = array<i64: 1, 256, 128>}, {transform_indices = @transform_3, window_bounds = array<i64: 16, 128>}]} {
    %c0_i32 = arith.constant 0 : i32
    %0 = arith.cmpi eq, %arg1, %c0_i32 : i32
    %1 = arith.extui %0 : i1 to i32
    %c0_i32_0 = arith.constant 0 : i32
    %2 = arith.cmpi ne, %1, %c0_i32_0 : i32
    scf.if %2 {
      %cst_16 = arith.constant 0.000000e+00 : f32
      %25 = vector.broadcast %cst_16 : f32 to vector<16x128xf32>
      %c0_17 = arith.constant 0 : index
      %c0_18 = arith.constant 0 : index
      %26 = vector.load %arg6[%c0_17, %c0_18] : memref<16x128xf32, #tpu.memory_space<vmem>>, vector<16x128xf32>
      tpu.vector_store %arg6[%c0_17, %c0_18], %25 {strides = array<i32>} : memref<16x128xf32, #tpu.memory_space<vmem>>, vector<16x128xf32>,
    } else {
    }
    %c0 = arith.constant 0 : index
    %c0_1 = arith.constant 0 : index
    %3 = vector.load %arg2[%c0, %c0_1] : memref<16x128xf32, #tpu.memory_space<vmem>>, vector<16x128xf32>
    %c0_2 = arith.constant 0 : index
    %c0_3 = arith.constant 0 : index
    %c0_4 = arith.constant 0 : index
    %4 = vector.load %arg3[%c0_2, %c0_3, %c0_4] : memref<1x128x512xf32, #tpu.memory_space<vmem>>, vector<1x128x512xf32>
    %5 = vector.shape_cast %4 : vector<1x128x512xf32> to vector<128x512xf32>
    %cst = arith.constant dense<0.000000e+00> : vector<16x512xf32>
    %6 = tpu.matmul %3, %5, %cst {dimension_numbers = #tpu.dot_dimension_numbers<[1], [0], [0], [1], [0, 0, 1, 1], [], []>} : vector<16x128xf32>, vector<128x512xf32>, vector<16x512xf32> -> vector<16x512xf32>
    %7 = vector.extract_strided_slice %6 {offsets = [0, 0], sizes = [16, 256], strides = [1, 1]} : vector<16x512xf32> to vector<16x256xf32>
    %8 = vector.extract_strided_slice %6 {offsets = [0, 256], sizes = [16, 256], strides = [1, 1]} : vector<16x512xf32> to vector<16x256xf32>
    %9 = arith.negf %7 : vector<16x256xf32>
    %10 = math.exp %9 : vector<16x256xf32>
    %cst_5 = arith.constant 1.000000e+00 : f32
    %11 = vector.broadcast %cst_5 : f32 to vector<16x256xf32>
    %12 = arith.addf %11, %10 : vector<16x256xf32>
    %13 = arith.divf %11, %12 : vector<16x256xf32>
    %14 = arith.mulf %7, %13 : vector<16x256xf32>
    %15 = arith.mulf %14, %8 : vector<16x256xf32>
    %c0_6 = arith.constant 0 : index
    %c0_7 = arith.constant 0 : index
    %16 = vector.load %arg6[%c0_6, %c0_7] : memref<16x128xf32, #tpu.memory_space<vmem>>, vector<16x128xf32>
    %c0_8 = arith.constant 0 : index
    %c0_9 = arith.constant 0 : index
    %c0_10 = arith.constant 0 : index
    %17 = vector.load %arg4[%c0_8, %c0_9, %c0_10] : memref<1x256x128xf32, #tpu.memory_space<vmem>>, vector<1x256x128xf32>
    %18 = vector.shape_cast %17 : vector<1x256x128xf32> to vector<256x128xf32>
    %cst_11 = arith.constant dense<0.000000e+00> : vector<16x128xf32>
    %19 = tpu.matmul %15, %18, %cst_11 {dimension_numbers = #tpu.dot_dimension_numbers<[1], [0], [0], [1], [0, 0, 1, 1], [], []>} : vector<16x256xf32>, vector<256x128xf32>, vector<16x128xf32> -> vector<16x128xf32>
    %20 = arith.addf %16, %19 : vector<16x128xf32>
    %c0_12 = arith.constant 0 : index
    %c0_13 = arith.constant 0 : index
    %21 = vector.load %arg6[%c0_12, %c0_13] : memref<16x128xf32, #tpu.memory_space<vmem>>, vector<16x128xf32>
    tpu.vector_store %arg6[%c0_12, %c0_13], %20 {strides = array<i32>} : memref<16x128xf32, #tpu.memory_space<vmem>>, vector<16x128xf32>,
    %c0_i32_14 = arith.constant 0 : i32
    %22 = arith.cmpi eq, %arg1, %c0_i32_14 : i32
    %23 = arith.extui %22 : i1 to i32
    %c0_i32_15 = arith.constant 0 : i32
    %24 = arith.cmpi ne, %23, %c0_i32_15 : i32
    scf.if %24 {
      %c0_16 = arith.constant 0 : index
      %c0_17 = arith.constant 0 : index
      %25 = vector.load %arg6[%c0_16, %c0_17] : memref<16x128xf32, #tpu.memory_space<vmem>>, vector<16x128xf32>
      %c0_18 = arith.constant 0 : index
      %c0_19 = arith.constant 0 : index
      %26 = vector.load %arg5[%c0_18, %c0_19] : memref<16x128xf32, #tpu.memory_space<vmem>>, vector<16x128xf32>
      tpu.vector_store %arg5[%c0_18, %c0_19], %25 {strides = array<i32>} : memref<16x128xf32, #tpu.memory_space<vmem>>, vector<16x128xf32>,
    } else {
    }
    return
  }
  func.func @transform_0(%arg0: i32, %arg1: i32) -> (i32, i32) {
    %c0_i32 = arith.constant 0 : i32
    %c0_i32_0 = arith.constant 0 : i32
    return %arg0, %c0_i32 : i32, i32
  }
  func.func @transform_1(%arg0: i32, %arg1: i32) -> (i32, i32, i32) {
    %c0_i32 = arith.constant 0 : i32
    %c0_i32_0 = arith.constant 0 : i32
    %c0_i32_1 = arith.constant 0 : i32
    return %arg1, %c0_i32, %c0_i32_0 : i32, i32, i32
  }
  func.func @transform_2(%arg0: i32, %arg1: i32) -> (i32, i32, i32) {
    %c0_i32 = arith.constant 0 : i32
    %c0_i32_0 = arith.constant 0 : i32
    %c0_i32_1 = arith.constant 0 : i32
    return %arg1, %c0_i32, %c0_i32_0 : i32, i32, i32
  }
  func.func @transform_3(%arg0: i32, %arg1: i32) -> (i32, i32) {
    %c0_i32 = arith.constant 0 : i32
    %c0_i32_0 = arith.constant 0 : i32
    return %arg0, %c0_i32 : i32, i32
  }
}

</mosaic_0001>

<bundles_post_ra>
// kernel: tpu_custom_call.1
= control target key start
LH: loop header
LB: loop body
LE: loop exit
PB: predicated region body
PF: predicated region fallthrough
CT: control target
= control target key end

     0   :  { %8 = vsyncpa [#allocation4], 0  ;;  %s691_s0 = inlined_call_operand.hbm [shape: f32[16,128], index: 0, kind: input, shape index: {}]   ;;  %s692_s1 = inlined_call_operand.hbm [shape: f32[1,128,512], index: 1, kind: input, shape index: {}]   ;;  %s693_s2 = inlined_call_operand.hbm [shape: f32[1,256,128], index: 2, kind: input, shape index: {}]   ;;  %s694_s3 = inlined_call_operand.hbm [shape: f32[16,128], index: 3, kind: output, shape index: {}]  }
   0x1   :  { %9 = vsyncpa [#allocation7], 0 }
   0x2   :  { %10 = vsyncpa [#allocation5], 0  ;;  %s637_s12 = smov [#allocation6]  }
   0x3   :  { %s28_s13 = sshll.u32 %s637_s12, 4  ;;  %s29_s13 = int_to_ptr.vmem [resolvable:$true] %s28_s13 }
   0x4   :  { %s559_s14 = scalar_lea.vmem %s29_s13, 8192  ;;  %p564_p1 = scmp.lt.s32.totalorder %s29_s13, %s29_s13 }
   0x5   :  { %p560_p0 = scmp.ne.s32.totalorder %s29_s13, %s559_s14  ;;  %p565_p2 = scmp.lt.s32.totalorder %s559_s14, %s559_s14 }
   0x7   :  { %p566_p3 = por %p565_p2, %p564_p1 }
   0x9   :  { %p567_p4 = pnand %p566_p3, %p560_p0 }
   0xb   :  { %570 = shalt.err (!%p567_p4)
}
   0xc   :  { %s638_s15 = smov 512   ;;  %s639_s16 = smov 32  }
   0xd   :  { %34 = dma.hbm_to_vmem [thread:$0]  %s692_s1, 8192, %s29_s13, [#allocation7], %s638_s15, %s638_s15, %s639_s16  }
   0xe   :  { %s640_s19 = smov [#allocation3]  }
   0xf   :  { %s16_s20 = sshll.u32 %s640_s19, 4  ;;  %s17_s20 = int_to_ptr.vmem [resolvable:$true] %s16_s20 }
  0x10   :  { %s579_s21 = scalar_lea.vmem %s17_s20, 256  ;;  %p584_p6 = scmp.lt.s32.totalorder %s17_s20, %s17_s20 }
  0x11   :  { %p580_p5 = scmp.ne.s32.totalorder %s17_s20, %s579_s21  ;;  %p585_p7 = scmp.lt.s32.totalorder %s579_s21, %s579_s21 }
  0x13   :  { %p586_p8 = por %p585_p7, %p584_p6 }
  0x15   :  { %p587_p9 = pnand %p586_p8, %p580_p5 }
  0x17   :  { %590 = shalt.err (!%p587_p9)
}
  0x18   :  { %s641_s22 = smov 128   ;;  %s642_s23 = smov 8  }
  0x19   :  { %22 = dma.hbm_to_vmem [thread:$0]  %s691_s0, 256, %s17_s20, [#allocation4], %s641_s22, %s641_s22, %s642_s23  }
  0x1a   :  { %s643_s1 = smov [#allocation8]  }
  0x1b   :  { %s40_s26 = sshll.u32 %s643_s1, 4  ;;  %s41_s26 = int_to_ptr.vmem [resolvable:$true] %s40_s26 }
  0x1c   :  { %s599_s27 = scalar_lea.vmem %s41_s26, 4096  ;;  %p604_p11 = scmp.lt.s32.totalorder %s41_s26, %s41_s26 }
  0x1d   :  { %p600_p10 = scmp.ne.s32.totalorder %s41_s26, %s599_s27  ;;  %p605_p12 = scmp.lt.s32.totalorder %s599_s27, %s599_s27 }
  0x1f   :  { %p606_p13 = por %p605_p12, %p604_p11 }
  0x21   :  { %p607_p0 = pnand %p606_p13, %p600_p10 }
  0x23   :  { %610 = shalt.err (!%p607_p0)
}
  0x24   :  { %46 = dma.hbm_to_vmem [thread:$0]  %s693_s2, 4096, %s41_s26, [#allocation7], %s641_s22, %s641_s22, %s642_s23  }
  0x25   :  { %631 = dma.done.wait [#allocation4], 256  }
  0x26   :  { %632 = vsyncadd [#allocation4], 4294967040 }
  0x27   :  { %633 = dma.done.wait [#allocation7], 12288  }
  0x28   :  { %634 = vsyncadd [#allocation7], 4294955008  ;;  %v644_v0 = vmov 0.0   ;;  %v125_v1 = vld [vmem:[#allocation6 + $0x1e8] sm:$0xff]  ;;  %v124_v2 = vld [vmem:[#allocation6 + $0x1e0] sm:$0xff]  ;;  %s645_s0 = smov [#allocation9]  }
  0x29   :  { %192 = vmatprep.mubr.f32.mxu0 %v644_v0  ;;  %269 = vmatprep.mubr.f32.mxu1 %v644_v0  ;;  %v121_v3 = vld [vmem:[#allocation6 + $0x1c8] sm:$0xff]  ;;  %v120_v4 = vld [vmem:[#allocation6 + $0x1c0] sm:$0xff]  ;;  %v127_v15 = vld [vmem:[#allocation6 + $0x1f8] sm:$0xff]  ;;  %s439_s2 = sshll.u32 %s645_s0, 4  ;;  %s440_s2 = int_to_ptr.vmem [resolvable:$true] %s439_s2 }
  0x2a   :  { %128 = vmatprep.subr.mxu0 %v125_v1  ;;  %v117_v5 = vld [vmem:[#allocation6 + $0x1a8] sm:$0xff]  ;;  %v116_v6 = vld [vmem:[#allocation6 + $0x1a0] sm:$0xff]  ;;  %v126_v16 = vld [vmem:[#allocation6 + $0x1f0] sm:$0xff]  ;;  %205 = vmatprep.subr.mxu1 %v127_v15  ;;  %s611_s30 = scalar_lea.vmem %s440_s2, 256  ;;  %p616_p2 = scmp.lt.s32.totalorder %s440_s2, %s440_s2 }
  0x2b   :  { %129 = vmatpush1.msra.mxu0 %v124_v2  ;;  %v113_v7 = vld [vmem:[#allocation6 + $0x188] sm:$0xff]  ;;  %v112_v8 = vld [vmem:[#allocation6 + $0x180] sm:$0xff]  ;;  %v123_v17 = vld [vmem:[#allocation6 + $0x1d8] sm:$0xff]  ;;  %206 = vmatpush1.msra.mxu1 %v126_v16  ;;  %p612_p1 = scmp.ne.s32.totalorder %s440_s2, %s611_s30  ;;  %p617_p3 = scmp.lt.s32.totalorder %s611_s30, %s611_s30 }
  0x2c   :  { %130 = vmatprep.subr.mxu0 %v121_v3  ;;  %v109_v9 = vld [vmem:[#allocation6 + $0x168] sm:$0xff]  ;;  %v108_v10 = vld [vmem:[#allocation6 + $0x160] sm:$0xff]  ;;  %v122_v19 = vld [vmem:[#allocation6 + $0x1d0] sm:$0xff]  ;;  %207 = vmatprep.subr.mxu1 %v123_v17 }
  0x2d   :  { %131 = vmatpush1.msra.mxu0 %v120_v4  ;;  %v105_v11 = vld [vmem:[#allocation6 + $0x148] sm:$0xff]  ;;  %v104_v12 = vld [vmem:[#allocation6 + $0x140] sm:$0xff]  ;;  %v119_v21 = vld [vmem:[#allocation6 + $0x1b8] sm:$0xff]  ;;  %208 = vmatpush1.msra.mxu1 %v122_v19  ;;  %p618_p4 = por %p617_p3, %p616_p2 }
  0x2e   :  { %132 = vmatprep.subr.mxu0 %v117_v5  ;;  %v101_v13 = vld [vmem:[#allocation6 + $0x128] sm:$0xff]  ;;  %v100_v14 = vld [vmem:[#allocation6 + $0x120] sm:$0xff]  ;;  %v118_v23 = vld [vmem:[#allocation6 + $0x1b0] sm:$0xff]  ;;  %209 = vmatprep.subr.mxu1 %v119_v21 }
  0x2f   :  { %133 = vmatpush1.msra.mxu0 %v116_v6  ;;  %v97_v18 = vld [vmem:[#allocation6 + $0x108] sm:$0xff]  ;;  %v96_v20 = vld [vmem:[#allocation6 + $0x100] sm:$0xff]  ;;  %v115_v25 = vld [vmem:[#allocation6 + $0x198] sm:$0xff]  ;;  %210 = vmatpush1.msra.mxu1 %v118_v23  ;;  %p619_p5 = pnand %p618_p4, %p612_p1 }
  0x30   :  { %134 = vmatprep.subr.mxu0 %v113_v7  ;;  %v93_v22 = vld [vmem:[#allocation6 + $0xe8] sm:$0xff]  ;;  %v92_v24 = vld [vmem:[#allocation6 + $0xe0] sm:$0xff]  ;;  %v114_v27 = vld [vmem:[#allocation6 + $0x190] sm:$0xff]  ;;  %211 = vmatprep.subr.mxu1 %v115_v25 }
  0x31   :  { %135 = vmatpush1.msra.mxu0 %v112_v8  ;;  %v89_v26 = vld [vmem:[#allocation6 + $0xc8] sm:$0xff]  ;;  %v88_v28 = vld [vmem:[#allocation6 + $0xc0] sm:$0xff]  ;;  %v111_v29 = vld [vmem:[#allocation6 + $0x178] sm:$0xff]  ;;  %212 = vmatpush1.msra.mxu1 %v114_v27 }
  0x32   :  { %136 = vmatprep.subr.mxu0 %v109_v9  ;;  %v85_v30 = vld [vmem:[#allocation6 + $0xa8] sm:$0xff]  ;;  %v110_v31 = vld [vmem:[#allocation6 + $0x170] sm:$0xff]  ;;  %v84_v32 = vld [vmem:[#allocation6 + $0xa0] sm:$0xff]  ;;  %213 = vmatprep.subr.mxu1 %v111_v29 }
  0x33   :  { %137 = vmatpush1.msra.mxu0 %v108_v10  ;;  %v107_v33 = vld [vmem:[#allocation6 + $0x158] sm:$0xff]  ;;  %v81_v34 = vld [vmem:[#allocation6 + $0x88] sm:$0xff]  ;;  %v106_v35 = vld [vmem:[#allocation6 + $0x150] sm:$0xff]  ;;  %214 = vmatpush1.msra.mxu1 %v110_v31 }
  0x34   :  { %138 = vmatprep.subr.mxu0 %v105_v11  ;;  %v80_v36 = vld [vmem:[#allocation6 + $0x80] sm:$0xff]  ;;  %v103_v37 = vld [vmem:[#allocation6 + $0x138] sm:$0xff]  ;;  %v77_v38 = vld [vmem:[#allocation6 + $0x68] sm:$0xff]  ;;  %215 = vmatprep.subr.mxu1 %v107_v33 }
  0x35   :  { %139 = vmatpush1.msra.mxu0 %v104_v12  ;;  %v102_v39 = vld [vmem:[#allocation6 + $0x130] sm:$0xff]  ;;  %v76_v40 = vld [vmem:[#allocation6 + $0x60] sm:$0xff]  ;;  %216 = vmatpush1.msra.mxu1 %v106_v35  ;;  %v99_v41 = vld [vmem:[#allocation6 + $0x118] sm:$0xff] }
  0x36   :  { %140 = vmatprep.subr.mxu0 %v101_v13  ;;  %v73_v42 = vld [vmem:[#allocation6 + $0x48] sm:$0xff]  ;;  %217 = vmatprep.subr.mxu1 %v103_v37  ;;  %v98_v43 = vld [vmem:[#allocation6 + $0x110] sm:$0xff]  ;;  %v72_v44 = vld [vmem:[#allocation6 + $0x40] sm:$0xff] }
  0x37   :  { %141 = vmatpush1.msra.mxu0 %v100_v14  ;;  %218 = vmatpush1.msra.mxu1 %v102_v39  ;;  %v95_v45 = vld [vmem:[#allocation6 + $0xf8] sm:$0xff]  ;;  %v69_v46 = vld [vmem:[#allocation6 + $0x28] sm:$0xff]  ;;  %v94_v47 = vld [vmem:[#allocation6 + $0xf0] sm:$0xff] }
  0x38   :  { %142 = vmatprep.subr.mxu0 %v97_v18  ;;  %219 = vmatprep.subr.mxu1 %v99_v41  ;;  %v68_v48 = vld [vmem:[#allocation6 + $0x20] sm:$0xff]  ;;  %v91_v49 = vld [vmem:[#allocation6 + $0xd8] sm:$0xff]  ;;  %v65_v50 = vld [vmem:[#allocation6 + $0x8] sm:$0xff] }
  0x39   :  { %143 = vmatpush1.msra.mxu0 %v96_v20  ;;  %220 = vmatpush1.msra.mxu1 %v98_v43  ;;  %v90_v51 = vld [vmem:[#allocation6 + $0xd0] sm:$0xff]  ;;  %v64_v52 = vld [vmem:[#allocation6] sm:$0xff]  ;;  %v87_v53 = vld [vmem:[#allocation6 + $0xb8] sm:$0xff] }
  0x3a   :  { %144 = vmatprep.subr.mxu0 %v93_v22  ;;  %221 = vmatprep.subr.mxu1 %v95_v45  ;;  %v62_v54 = vld [vmem:[#allocation3] sm:$0xff]  ;;  %v83_v56 = vld [vmem:[#allocation6 + $0x98] sm:$0xff]  ;;  %v345_v8 = vld [vmem:[#allocation8 + $0xe8] sm:$0xff] }
  0x3b   :  { %145 = vmatpush1.msra.mxu0 %v92_v24  ;;  %222 = vmatpush1.msra.mxu1 %v94_v47  ;;  %v86_v55 = vld [vmem:[#allocation6 + $0xb0] sm:$0xff]  ;;  %v79_v58 = vld [vmem:[#allocation6 + $0x78] sm:$0xff]  ;;  %v329_v9 = vld [vmem:[#allocation8 + $0x68] sm:$0xff] }
  0x3c   :  { %146 = vmatprep.subr.mxu0 %v89_v26  ;;  %223 = vmatprep.subr.mxu1 %v91_v49  ;;  %v82_v57 = vld [vmem:[#allocation6 + $0x90] sm:$0xff]  ;;  %v63_v59 = vld [vmem:[#allocation3 + $0x8] sm:$0xff]  ;;  %v344_v10 = vld [vmem:[#allocation8 + $0xe0] sm:$0xff] }
  0x3d   :  { %147 = vmatpush1.msra.mxu0 %v88_v28  ;;  %224 = vmatpush1.msra.mxu1 %v90_v51  ;;  %v78_v60 = vld [vmem:[#allocation6 + $0x70] sm:$0xff]  ;;  %v75_v61 = vld [vmem:[#allocation6 + $0x58] sm:$0xff]  ;;  %v341_v15 = vld [vmem:[#allocation8 + $0xc8] sm:$0xff] }
  0x3e   :  { %148 = vmatprep.subr.mxu0 %v85_v30  ;;  %225 = vmatprep.subr.mxu1 %v87_v53  ;;  %v74_v62 = vld [vmem:[#allocation6 + $0x50] sm:$0xff]  ;;  %v71_v63 = vld [vmem:[#allocation6 + $0x38] sm:$0xff]  ;;  %v325_v16 = vld [vmem:[#allocation8 + $0x48] sm:$0xff] }
  0x3f   :  { %149 = vmatpush1.msra.mxu0 %v84_v32  ;;  %226 = vmatpush1.msra.mxu1 %v86_v55  ;;  %v70_v1 = vld [vmem:[#allocation6 + $0x30] sm:$0xff]  ;;  %v67_v2 = vld [vmem:[#allocation6 + $0x18] sm:$0xff]  ;;  %v340_v17 = vld [vmem:[#allocation8 + $0xc0] sm:$0xff] }
  0x40   :  { %150 = vmatprep.subr.mxu0 %v81_v34  ;;  %227 = vmatprep.subr.mxu1 %v83_v56  ;;  %v66_v3 = vld [vmem:[#allocation6 + $0x10] sm:$0xff]  ;;  %v347_v4 = vld [vmem:[#allocation8 + $0xf8] sm:$0xff]  ;;  %v324_v18 = vld [vmem:[#allocation8 + $0x40] sm:$0xff] }
  0x41   :  { %151 = vmatpush1.msra.mxu0 %v80_v36  ;;  %228 = vmatpush1.msra.mxu1 %v82_v57  ;;  %v331_v5 = vld [vmem:[#allocation8 + $0x78] sm:$0xff]  ;;  %v346_v6 = vld [vmem:[#allocation8 + $0xf0] sm:$0xff]  ;;  %v337_v23 = vld [vmem:[#allocation8 + $0xa8] sm:$0xff] }
  0x42   :  { %152 = vmatprep.subr.mxu0 %v77_v38  ;;  %229 = vmatprep.subr.mxu1 %v79_v58  ;;  %v330_v7 = vld [vmem:[#allocation8 + $0x70] sm:$0xff]  ;;  %v343_v11 = vld [vmem:[#allocation8 + $0xd8] sm:$0xff]  ;;  %v321_v24 = vld [vmem:[#allocation8 + $0x28] sm:$0xff] }
  0x43   :  { %153 = vmatpush1.msra.mxu0 %v76_v40  ;;  %230 = vmatpush1.msra.mxu1 %v78_v60  ;;  %v327_v12 = vld [vmem:[#allocation8 + $0x58] sm:$0xff]  ;;  %v342_v13 = vld [vmem:[#allocation8 + $0xd0] sm:$0xff]  ;;  %v336_v25 = vld [vmem:[#allocation8 + $0xa0] sm:$0xff] }
  0x44   :  { %154 = vmatprep.subr.mxu0 %v73_v42  ;;  %231 = vmatprep.subr.mxu1 %v75_v61  ;;  %v326_v14 = vld [vmem:[#allocation8 + $0x50] sm:$0xff]  ;;  %v339_v19 = vld [vmem:[#allocation8 + $0xb8] sm:$0xff]  ;;  %v320_v26 = vld [vmem:[#allocation8 + $0x20] sm:$0xff] }
  0x45   :  { %155 = vmatpush1.msra.mxu0 %v72_v44  ;;  %232 = vmatpush1.msra.mxu1 %v74_v62  ;;  %v323_v20 = vld [vmem:[#allocation8 + $0x38] sm:$0xff]  ;;  %v338_v21 = vld [vmem:[#allocation8 + $0xb0] sm:$0xff]  ;;  %v333_v31 = vld [vmem:[#allocation8 + $0x88] sm:$0xff] }
  0x46   :  { %156 = vmatprep.subr.mxu0 %v69_v46  ;;  %233 = vmatprep.subr.mxu1 %v71_v63  ;;  %v322_v22 = vld [vmem:[#allocation8 + $0x30] sm:$0xff]  ;;  %v335_v27 = vld [vmem:[#allocation8 + $0x98] sm:$0xff]  ;;  %v317_v32 = vld [vmem:[#allocation8 + $0x8] sm:$0xff] }
  0x47   :  { %157 = vmatpush1.msra.mxu0 %v68_v48  ;;  %234 = vmatpush1.msra.mxu1 %v70_v1  ;;  %v319_v28 = vld [vmem:[#allocation8 + $0x18] sm:$0xff]  ;;  %v334_v29 = vld [vmem:[#allocation8 + $0x90] sm:$0xff]  ;;  %v332_v33 = vld [vmem:[#allocation8 + $0x80] sm:$0xff] }
  0x48   :  { %158 = vmatprep.subr.mxu0 %v65_v50  ;;  %235 = vmatprep.subr.mxu1 %v67_v2  ;;  %v318_v30 = vld [vmem:[#allocation8 + $0x10] sm:$0xff]  ;;  %v316_v34 = vld [vmem:[#allocation8] sm:$0xff] }
  0x49   :  { %159 = vmatpush1.msra.mxu0 %v64_v52  ;;  %236 = vmatpush1.msra.mxu1 %v66_v3 }
  0x4a   :  { %193 = vmatmul.mubr.f32.vlgmr.msra.gmra.mxu0 %v62_v54  ;;  %270 = vmatmul.mubr.f32.vlgmr.msra.gmra.mxu1 %v62_v54 }
  0x4b   :  { %198 = vmatprep.mubr.f32.mxu0 %v644_v0  ;;  %275 = vmatprep.mubr.f32.mxu1 %v644_v0  ;;  %v328_v0 = vld [vmem:[#allocation8 + $0x60] sm:$0xff] }
  0x4c   :  { %456 = vmatprep.subr.mxu0 %v347_v4  ;;  %494 = vmatprep.subr.mxu1 %v347_v4 }
  0x4d   :  { %457 = vmatpush3.msra.mxu0 %v331_v5  ;;  %510 = vmatpush3.msra.mxu1 %v331_v5 }
  0x4e   :  { %199 = vmatmul.mubr.f32.gmra.mxu0 %v63_v59  ;;  %276 = vmatmul.mubr.f32.gmra.mxu1 %v63_v59 }
  0x4f   :  { %458 = vmatprep.subr.mxu0 %v346_v6  ;;  %495 = vmatprep.subr.mxu1 %v346_v6 }
  0x50   :  { %459 = vmatpush3.msra.mxu0 %v330_v7  ;;  %511 = vmatpush3.msra.mxu1 %v330_v7 }
  0x51   :  { %460 = vmatprep.subr.mxu0 %v345_v8  ;;  %496 = vmatprep.subr.mxu1 %v345_v8 }
  0x52   :  { %461 = vmatpush3.msra.mxu0 %v329_v9  ;;  %512 = vmatpush3.msra.mxu1 %v329_v9 }
  0x53   :  { %462 = vmatprep.subr.mxu0 %v344_v10  ;;  %497 = vmatprep.subr.mxu1 %v344_v10 }
  0x54   :  { %463 = vmatpush3.msra.mxu0 %v328_v0  ;;  %513 = vmatpush3.msra.mxu1 %v328_v0 }
  0x55   :  { %464 = vmatprep.subr.mxu0 %v343_v11  ;;  %498 = vmatprep.subr.mxu1 %v343_v11 }
  0x56   :  { %465 = vmatpush3.msra.mxu0 %v327_v12  ;;  %514 = vmatpush3.msra.mxu1 %v327_v12 }
  0x57   :  { %466 = vmatprep.subr.mxu0 %v342_v13  ;;  %499 = vmatprep.subr.mxu1 %v342_v13 }
  0x58   :  { %467 = vmatpush3.msra.mxu0 %v326_v14  ;;  %515 = vmatpush3.msra.mxu1 %v326_v14 }
  0x59   :  { %468 = vmatprep.subr.mxu0 %v341_v15  ;;  %500 = vmatprep.subr.mxu1 %v341_v15 }
  0x5a   :  { %469 = vmatpush3.msra.mxu0 %v325_v16  ;;  %516 = vmatpush3.msra.mxu1 %v325_v16 }
  0x5b   :  { %470 = vmatprep.subr.mxu0 %v340_v17  ;;  %501 = vmatprep.subr.mxu1 %v340_v17 }
  0x5c   :  { %471 = vmatpush3.msra.mxu0 %v324_v18  ;;  %517 = vmatpush3.msra.mxu1 %v324_v18 }
  0x5d   :  { %472 = vmatprep.subr.mxu0 %v339_v19  ;;  %502 = vmatprep.subr.mxu1 %v339_v19 }
  0x5e   :  { %473 = vmatpush3.msra.mxu0 %v323_v20  ;;  %518 = vmatpush3.msra.mxu1 %v323_v20 }
  0x5f   :  { %474 = vmatprep.subr.mxu0 %v338_v21  ;;  %503 = vmatprep.subr.mxu1 %v338_v21 }
  0x60   :  { %475 = vmatpush3.msra.mxu0 %v322_v22  ;;  %519 = vmatpush3.msra.mxu1 %v322_v22 }
  0x61   :  { %476 = vmatprep.subr.mxu0 %v337_v23  ;;  %504 = vmatprep.subr.mxu1 %v337_v23 }
  0x62   :  { %477 = vmatpush3.msra.mxu0 %v321_v24  ;;  %520 = vmatpush3.msra.mxu1 %v321_v24 }
  0x63   :  { %478 = vmatprep.subr.mxu0 %v336_v25  ;;  %505 = vmatprep.subr.mxu1 %v336_v25 }
  0x64   :  { %479 = vmatpush3.msra.mxu0 %v320_v26  ;;  %521 = vmatpush3.msra.mxu1 %v320_v26 }
  0x65   :  { %480 = vmatprep.subr.mxu0 %v335_v27  ;;  %506 = vmatprep.subr.mxu1 %v335_v27 }
  0x66   :  { %481 = vmatpush3.msra.mxu0 %v319_v28  ;;  %522 = vmatpush3.msra.mxu1 %v319_v28 }
  0x67   :  { %482 = vmatprep.subr.mxu0 %v334_v29  ;;  %507 = vmatprep.subr.mxu1 %v334_v29 }
  0x68   :  { %483 = vmatpush3.msra.mxu0 %v318_v30  ;;  %523 = vmatpush3.msra.mxu1 %v318_v30 }
  0x69   :  { %484 = vmatprep.subr.mxu0 %v333_v31  ;;  %508 = vmatprep.subr.mxu1 %v333_v31 }
  0x6a   :  { %485 = vmatpush3.msra.mxu0 %v317_v32  ;;  %524 = vmatpush3.msra.mxu1 %v317_v32 }
  0x6b   :  { %486 = vmatprep.subr.mxu0 %v332_v33  ;;  %509 = vmatprep.subr.mxu1 %v332_v33 }
  0x6c   :  { %487 = vmatpush3.msra.mxu0 %v316_v34  ;;  %525 = vmatpush3.msra.mxu1 %v316_v34 }
 0x10a   :  { %v194_v35 = vpop.f32.mrf.mxu0  ;;  %v271_v51 = vpop.f32.mrf.mxu1 }
 0x10b   :  { %v452_v36 = vmul.f32 -1.442695, %v194_v35 }
 0x10c   :  { %v196_v37 = vpop.f32.mrf.mxu0  ;;  %v273_v53 = vpop.f32.mrf.mxu1 }
 0x10d   :  { %535 = vpow2.f32 %v452_v36  ;;  %v453_v38 = vmul.f32 -1.442695, %v196_v37 }
 0x10e   :  { %v200_v39 = vpop.f32.mrf.mxu0  ;;  %v277_v58 = vpop.f32.mrf.mxu1 }
 0x10f   :  { %537 = vpow2.f32 %v453_v38  ;;  %v454_v40 = vmul.f32 -1.442695, %v200_v39 }
 0x110   :  { %v202_v41 = vpop.f32.mrf.mxu0  ;;  %v279_v1 = vpop.f32.mrf.mxu1 }
 0x111   :  { %539 = vpow2.f32 %v454_v40  ;;  %v455_v42 = vmul.f32 -1.442695, %v202_v41 }
 0x113   :  { %541 = vpow2.f32 %v455_v42 }
 0x11a   :  { %v536_v43 = vpop.eup %535 }
 0x11b   :  { %v294_v44 = vadd.f32 1.0, %v536_v43 }
 0x11c   :  { %v538_v45 = vpop.eup %537 }
 0x11d   :  { %543 = vrcp.f32 %v294_v44  ;;  %v295_v46 = vadd.f32 1.0, %v538_v45 }
 0x11e   :  { %v540_v47 = vpop.eup %539 }
 0x11f   :  { %545 = vrcp.f32 %v295_v46  ;;  %v296_v48 = vadd.f32 1.0, %v540_v47 }
 0x120   :  { %v542_v49 = vpop.eup %541 }
 0x121   :  { %547 = vrcp.f32 %v296_v48  ;;  %v297_v50 = vadd.f32 1.0, %v542_v49 }
 0x123   :  { %549 = vrcp.f32 %v297_v50 }
 0x12a   :  { %v544_v52 = vpop.eup %543 }
 0x12b   :  { %v306_v55 = vmul.f32 %v544_v52, %v194_v35 }
 0x12c   :  { %v546_v54 = vpop.eup %545 }
 0x12d   :  { %v307_v56 = vmul.f32 %v546_v54, %v196_v37  ;;  %v310_v62 = vmul.f32 %v306_v55, %v271_v51 }
 0x12e   :  { %v548_v57 = vpop.eup %547 }
 0x12f   :  { %v311_v59 = vmul.f32 %v307_v56, %v273_v53  ;;  %v308_v61 = vmul.f32 %v548_v57, %v200_v39 }
 0x130   :  { %v550_v60 = vpop.eup %549 }
 0x131   :  { %v309_v63 = vmul.f32 %v550_v60, %v202_v41  ;;  %412 = vmatprep.mubr.f32.mxu0 %v311_v59  ;;  %v312_v3 = vmul.f32 %v308_v61, %v277_v58 }
 0x132   :  { %413 = vmatmul.mubr.f32.vlgmr.msra.gmra.mxu0 %v310_v62 }
 0x133   :  { %v313_v2 = vmul.f32 %v309_v63, %v279_v1 }
 0x135   :  { %417 = vmatprep.mubr.f32.mxu1 %v313_v2 }
 0x136   :  { %418 = vmatmul.mubr.f32.vlgmr.msra.gmra.mxu1 %v312_v3 }
 0x1f2   :  { %v488_v4 = vpop.f32.mrf.mxu0 }
 0x1f4   :  { %v489_v5 = vpop.f32.mrf.mxu0 }
 0x1f5   :  { %v490_v6 = vadd.f32 %v489_v5, %v488_v4 }
 0x1f6   :  { %v491_v7 = vpop.f32.mrf.mxu1 }
 0x1f7   :  { %432 = vst [vmem:[#allocation9] sm:$0xff] %v490_v6 }
 0x1f8   :  { %v492_v8 = vpop.f32.mrf.mxu1 }
 0x1f9   :  { %v493_v9 = vadd.f32 %v492_v8, %v491_v7 }
 0x1fb   :  { %433 = vst [vmem:[#allocation9 + $0x8] sm:$0xff] %v493_v9 }
 0x1fc   :  { %622 = shalt.err (!%p619_p5)
}
 0x1fd   :  { %445 = dma.vmem_to_hbm [thread:$0]  %s440_s2, 256, %s694_s3, [#allocation5], %s641_s22, %s641_s22, %s642_s23  }
 0x1fe   :  { %635 = dma.done.wait [#allocation5], 256  }
 0x1ff   :  { %636 = vsyncadd [#allocation5], 4294967040 }
 0x200   :  { %449 = vsyncpa [#allocation4], 1 }
 0x201   :  { %450 = vsyncpa [#allocation7], 1 }
 0x202   :  { %451 = vsyncpa [#allocation5], 1 }

</bundles_post_ra>
